<compile_context>
chip_gen: v7x
topology: tpu7x:2x2x1
jax: 0.10.0
libtpu: 0.0.40
codegen_flags: <defaults>
</compile_context>

<pallas_src>
import functools
import math

import jax
import jax.numpy as jnp
from jax.experimental import pallas as pl
from jax.experimental.pallas import tpu as pltpu

# ---------------------------------------------------------------------------
# Synthetic config mirroring tcnn "encoding_deform3d" / "network_deform":
#   HashGrid: 8 levels x 2 features, 2^14 table, base res 16, scale 1.5
#   FullyFusedMLP: 2 hidden layers of 64, ReLU, linear output, no bias
# ---------------------------------------------------------------------------
N_LEVELS = 8
F_PER_LEVEL = 2
LOG2_HASHMAP = 14
TABLE_SIZE = 1 << LOG2_HASHMAP
BASE_RES = 16
PER_LEVEL_SCALE = 1.5

ENC_DIM = N_LEVELS * F_PER_LEVEL          # encoder.n_output_dims == 16
X_DIM = 3
X_PAD = 8                                 # xyz padded to one full sublane granule
IN_DIM = ENC_DIM + X_DIM                  # decoder n_input_dims == 19
HIDDEN = 64
OUT_DIM = 2

_P0 = jnp.uint32(1)
_P1 = jnp.uint32(2654435761)
_P2 = jnp.uint32(805459861)


# ---------------------------------------------------------------------------
# Hash-grid encoding (plain JAX glue: integer hashing + single gather +
# trilinear interpolation).  Emitted directly in the transposed (F*L, N)
# layout so no big XLA transpose of the encoding is needed before the
# Pallas decoder.
# ---------------------------------------------------------------------------
def hash_encode_t(x, tables):
    """x: (N, 3) float32 in [0,1]; tables: (L, T, F) float32 -> (L*F, N)."""
    n = x.shape[0]

    # Per-level grid resolutions (static).
    res = jnp.array(
        [int(math.floor(BASE_RES * (PER_LEVEL_SCALE ** l))) for l in range(N_LEVELS)],
        dtype=jnp.float32)                                   # (L,)

    pos = x[None, :, :] * res[:, None, None]                 # (L, N, 3)
    pos_floor = jnp.floor(pos)
    frac = pos - pos_floor                                   # (L, N, 3)
    base = pos_floor.astype(jnp.uint32)                      # (L, N, 3)

    # All 8 cube-corner offsets at once.
    corner_offs = jnp.array(
        [[(c >> d) & 1 for d in range(3)] for c in range(8)], dtype=jnp.uint32)  # (8,3)

    idx3 = base[:, None, :, :] + corner_offs[None, :, None, :]       # (L, 8, N, 3)
    h = (idx3[..., 0] * _P0) ^ (idx3[..., 1] * _P1) ^ (idx3[..., 2] * _P2)
    hidx = (h & jnp.uint32(TABLE_SIZE - 1)).astype(jnp.int32)        # (L, 8, N)

    # One big gather over a flattened (F, L*T) table.
    lvl_off = (jnp.arange(N_LEVELS, dtype=jnp.int32) * TABLE_SIZE)[:, None, None]
    flat_idx = (hidx + lvl_off).reshape(-1)                          # (L*8*N,)
    tables_flat = jnp.transpose(tables, (2, 0, 1)).reshape(
        F_PER_LEVEL, N_LEVELS * TABLE_SIZE)                          # (F, L*T)
    gathered = jnp.take(tables_flat, flat_idx, axis=1).reshape(
        F_PER_LEVEL, N_LEVELS, 8, n)                                 # (F, L, 8, N)

    # Trilinear weights.
    offs_f = corner_offs.astype(jnp.float32)[None, :, None, :]       # (1, 8, 1, 3)
    w = jnp.prod(jnp.where(offs_f > 0.0, frac[:, None, :, :],
                           1.0 - frac[:, None, :, :]), axis=-1)      # (L, 8, N)

    feat = jnp.sum(w[None, :, :, :] * gathered, axis=2)              # (F, L, N)
    # Level-major, feature-minor ordering (matches per-level concat).
    return jnp.transpose(feat, (1, 0, 2)).reshape(ENC_DIM, n)        # (L*F, N)


# ---------------------------------------------------------------------------
# Pallas kernel: transposed decoder MLP.
#   y^T = W3^T @ relu(W2^T @ relu(W1x^T @ x^T + W1e^T @ enc^T)) * 0.2
# All matmuls accumulate in f32 (preferred_element_type); operands are bf16.
# ---------------------------------------------------------------------------
def _decoder_kernel(xt_ref, enct_ref, w1x_ref, w1e_ref, w2_ref, w3_ref, o_ref):
    cd = w2_ref.dtype
    h = jnp.dot(w1x_ref[...], xt_ref[...], preferred_element_type=jnp.float32)
    h = h + jnp.dot(w1e_ref[...], enct_ref[...],
                    preferred_element_type=jnp.float32)
    h = jnp.maximum(h, 0.0).astype(cd)
    h = jnp.dot(w2_ref[...], h, preferred_element_type=jnp.float32)
    h = jnp.maximum(h, 0.0).astype(cd)
    y = jnp.dot(w3_ref[...], h, preferred_element_type=jnp.float32)
    o_ref[...] = (y * jnp.float32(0.2)).astype(o_ref.dtype)   # fold the /5


def decoder_pallas(xt, enct, w1x_t, w1e_t, w2_t, w3_t, *, tile_n=512):
    """xt: (X_PAD, N), enct: (ENC_DIM, N) -> y^T: (OUT_DIM, N) float32."""
    n = xt.shape[1]
    assert n % tile_n == 0, "lane count must be a multiple of tile_n"
    assert tile_n % 128 == 0, "tile_n must keep the lane dimension dense"
    return pl.pallas_call(
        _decoder_kernel,
        out_shape=jax.ShapeDtypeStruct((OUT_DIM, n), jnp.float32),
        grid_spec=pltpu.PrefetchScalarGridSpec(
            num_scalar_prefetch=0,
            grid=(n // tile_n,),
            in_specs=[
                pl.BlockSpec((X_PAD, tile_n), lambda i: (0, i)),     # x^T tile
                pl.BlockSpec((ENC_DIM, tile_n), lambda i: (0, i)),   # enc^T tile
                pl.BlockSpec((HIDDEN, X_PAD), lambda i: (0, 0)),     # W1x^T (full)
                pl.BlockSpec((HIDDEN, ENC_DIM), lambda i: (0, 0)),   # W1e^T (full)
                pl.BlockSpec((HIDDEN, HIDDEN), lambda i: (0, 0)),    # W2^T  (full)
                pl.BlockSpec((OUT_DIM, HIDDEN), lambda i: (0, 0)),   # W3^T  (full)
            ],
            out_specs=pl.BlockSpec((OUT_DIM, tile_n), lambda i: (0, i)),
        ),
        compiler_params=pltpu.CompilerParams(
            dimension_semantics=("parallel",)),
    )(xt, enct, w1x_t, w1e_t, w2_t, w3_t)


# ---------------------------------------------------------------------------
# Full forward: encode -> Pallas MLP (cat([x, enc]) done as two dots) -> /5
# ---------------------------------------------------------------------------
def xyt2grid_forward(x, tables, w1, w2, w3, *, tile_n=512,
                     compute_dtype=jnp.bfloat16):
    n = x.shape[0]
    enct = hash_encode_t(x, tables)                         # (16, N)
    xt = jnp.pad(x.T, ((0, X_PAD - X_DIM), (0, 0)))         # (8, N), zero rows

    # Pad N (lane dim) to a multiple of tile_n; padded columns are all-zero and
    # get sliced away below.
    n_pad = pl.cdiv(n, tile_n) * tile_n
    if n_pad != n:
        xt = jnp.pad(xt, ((0, 0), (0, n_pad - n)))
        enct = jnp.pad(enct, ((0, 0), (0, n_pad - n)))

    # Split + transpose weights once; cat([x, enc]) @ W1 == x @ W1[:3] + enc @ W1[3:]
    w1x_t = jnp.pad(w1[:X_DIM].T, ((0, 0), (0, X_PAD - X_DIM)))   # (H, 8)
    w1e_t = w1[X_DIM:].T                                           # (H, 16)
    w2_t = w2.T                                                    # (H, H)
    w3_t = w3.T                                                    # (2, H)

    cd = compute_dtype
    out_t = decoder_pallas(xt.astype(cd), enct.astype(cd),
                           w1x_t.astype(cd), w1e_t.astype(cd),
                           w2_t.astype(cd), w3_t.astype(cd),
                           tile_n=tile_n)                          # (2, n_pad) f32
    return out_t[:, :n].T                                          # (N, 2)


def _reference_forward(x, tables, w1, w2, w3):
    enc = hash_encode_t(x, tables).T                        # (N, 16)
    feat = jnp.concatenate([x, enc], axis=1)                # (N, 19)
    h = jnp.maximum(feat @ w1, 0.0)
    h = jnp.maximum(h @ w2, 0.0)
    return (h @ w3) / 5.0


if __name__ == "__main__":
    key = jax.random.PRNGKey(0)
    kx, kt, k1, k2, k3 = jax.random.split(key, 5)

    N = 1024                                                # 2 grid steps @ tile_n=512
    x = jax.random.uniform(kx, (N, 3), dtype=jnp.float32)

    # Deterministic synthetic parameters (tcnn-like init scales).
    tables = jax.random.uniform(
        kt, (N_LEVELS, TABLE_SIZE, F_PER_LEVEL),
        minval=-1e-4, maxval=1e-4, dtype=jnp.float32)
    w1 = jax.random.normal(k1, (IN_DIM, HIDDEN), dtype=jnp.float32) / math.sqrt(IN_DIM)
    w2 = jax.random.normal(k2, (HIDDEN, HIDDEN), dtype=jnp.float32) / math.sqrt(HIDDEN)
    w3 = jax.random.normal(k3, (HIDDEN, OUT_DIM), dtype=jnp.float32) / math.sqrt(HIDDEN)

    fwd = jax.jit(functools.partial(xyt2grid_forward, tile_n=512))
    out = jax.block_until_ready(fwd(x, tables, w1, w2, w3))
    assert out.shape == (N, OUT_DIM) and out.dtype == jnp.float32

    ref = jax.block_until_ready(_reference_forward(x, tables, w1, w2, w3))
    # bf16 operands + f32 accumulation vs. pure-f32 reference -> loose tolerance.
    assert jnp.allclose(out, ref, atol=2e-2, rtol=2e-2), "Pallas decoder mismatch"

    print("KERNEL_OK")
</pallas_src>

<mosaic_0001>
module attributes {stable_mosaic.version = 11 : i64} {
  func.func private @main(%arg0: i32) attributes {dimension_semantics = [#tpu.dimension_semantics<core_parallel>], iteration_bounds = array<i64: 2>, tpu.core_type = #tpu.core_type<sc_scalar_subcore>, window_params = []} {
    return
  }
}

module attributes {stable_mosaic.version = 11 : i64} {
  func.func private @main(%arg0: i32) attributes {dimension_semantics = [#tpu.dimension_semantics<core_parallel>], iteration_bounds = array<i64: 2>, tpu.core_type = #tpu.core_type<sc_scalar_subcore>, window_params = []} {
    return
  }
}

module attributes {stable_mosaic.version = 11 : i64} {
  func.func @_decoder_kernel(%arg0: i32, %arg1: memref<8x512xbf16, #tpu.memory_space<vmem>>, %arg2: memref<16x512xbf16, #tpu.memory_space<vmem>>, %arg3: memref<64x8xbf16, #tpu.memory_space<vmem>>, %arg4: memref<64x16xbf16, #tpu.memory_space<vmem>>, %arg5: memref<64x64xbf16, #tpu.memory_space<vmem>>, %arg6: memref<2x64xbf16, #tpu.memory_space<vmem>>, %arg7: memref<2x512xf32, #tpu.memory_space<vmem>>) attributes {dimension_semantics = [#tpu.dimension_semantics<parallel>], iteration_bounds = array<i64: 2>, scalar_prefetch = 0 : i64, scratch_operands = 0 : i64, tpu.core_type = #tpu.core_type<tc>, window_params = [{transform_indices = @transform_0, window_bounds = array<i64: 8, 512>}, {transform_indices = @transform_1, window_bounds = array<i64: 16, 512>}, {pipeline_mode = #tpu.pipeline_mode<synchronous>, transform_indices = @transform_2, window_bounds = array<i64: 64, 8>}, {pipeline_mode = #tpu.pipeline_mode<synchronous>, transform_indices = @transform_3, window_bounds = array<i64: 64, 16>}, {pipeline_mode = #tpu.pipeline_mode<synchronous>, transform_indices = @transform_4, window_bounds = array<i64: 64, 64>}, {pipeline_mode = #tpu.pipeline_mode<synchronous>, transform_indices = @transform_5, window_bounds = array<i64: 2, 64>}, {transform_indices = @transform_6, window_bounds = array<i64: 2, 512>}]} {
    %c0 = arith.constant 0 : index
    %c0_0 = arith.constant 0 : index
    %0 = vector.load %arg3[%c0, %c0_0] : memref<64x8xbf16, #tpu.memory_space<vmem>>, vector<64x8xbf16>
    %c0_1 = arith.constant 0 : index
    %c0_2 = arith.constant 0 : index
    %1 = vector.load %arg1[%c0_1, %c0_2] : memref<8x512xbf16, #tpu.memory_space<vmem>>, vector<8x512xbf16>
    %cst = arith.constant dense<0.000000e+00> : vector<64x512xf32>
    %2 = tpu.matmul %0, %1, %cst {dimension_numbers = #tpu.dot_dimension_numbers<[1], [0], [0], [1], [0, 0, 1, 1], [], []>} : vector<64x8xbf16>, vector<8x512xbf16>, vector<64x512xf32> -> vector<64x512xf32>
    %c0_3 = arith.constant 0 : index
    %c0_4 = arith.constant 0 : index
    %3 = vector.load %arg4[%c0_3, %c0_4] : memref<64x16xbf16, #tpu.memory_space<vmem>>, vector<64x16xbf16>
    %c0_5 = arith.constant 0 : index
    %c0_6 = arith.constant 0 : index
    %4 = vector.load %arg2[%c0_5, %c0_6] : memref<16x512xbf16, #tpu.memory_space<vmem>>, vector<16x512xbf16>
    %cst_7 = arith.constant dense<0.000000e+00> : vector<64x512xf32>
    %5 = tpu.matmul %3, %4, %cst_7 {dimension_numbers = #tpu.dot_dimension_numbers<[1], [0], [0], [1], [0, 0, 1, 1], [], []>} : vector<64x16xbf16>, vector<16x512xbf16>, vector<64x512xf32> -> vector<64x512xf32>
    %6 = arith.addf %2, %5 : vector<64x512xf32>
    %cst_8 = arith.constant 0.000000e+00 : f32
    %7 = vector.broadcast %cst_8 : f32 to vector<64x512xf32>
    %8 = arith.maximumf %6, %7 : vector<64x512xf32>
    %9 = arith.truncf %8 : vector<64x512xf32> to vector<64x512xbf16>
    %c0_9 = arith.constant 0 : index
    %c0_10 = arith.constant 0 : index
    %10 = vector.load %arg5[%c0_9, %c0_10] : memref<64x64xbf16, #tpu.memory_space<vmem>>, vector<64x64xbf16>
    %cst_11 = arith.constant dense<0.000000e+00> : vector<64x512xf32>
    %11 = tpu.matmul %10, %9, %cst_11 {dimension_numbers = #tpu.dot_dimension_numbers<[1], [0], [0], [1], [0, 0, 1, 1], [], []>} : vector<64x64xbf16>, vector<64x512xbf16>, vector<64x512xf32> -> vector<64x512xf32>
    %cst_12 = arith.constant 0.000000e+00 : f32
    %12 = vector.broadcast %cst_12 : f32 to vector<64x512xf32>
    %13 = arith.maximumf %11, %12 : vector<64x512xf32>
    %14 = arith.truncf %13 : vector<64x512xf32> to vector<64x512xbf16>
    %c0_13 = arith.constant 0 : index
    %c0_14 = arith.constant 0 : index
    %15 = vector.load %arg6[%c0_13, %c0_14] : memref<2x64xbf16, #tpu.memory_space<vmem>>, vector<2x64xbf16>
    %cst_15 = arith.constant dense<0.000000e+00> : vector<2x512xf32>
    %16 = tpu.matmul %15, %14, %cst_15 {dimension_numbers = #tpu.dot_dimension_numbers<[1], [0], [0], [1], [0, 0, 1, 1], [], []>} : vector<2x64xbf16>, vector<64x512xbf16>, vector<2x512xf32> -> vector<2x512xf32>
    %cst_16 = arith.constant 2.000000e-01 : f32
    %17 = vector.broadcast %cst_16 : f32 to vector<2x512xf32>
    %18 = arith.mulf %16, %17 : vector<2x512xf32>
    %c0_17 = arith.constant 0 : index
    %c0_18 = arith.constant 0 : index
    %19 = vector.load %arg7[%c0_17, %c0_18] : memref<2x512xf32, #tpu.memory_space<vmem>>, vector<2x512xf32>
    tpu.vector_store %arg7[%c0_17, %c0_18], %18 {strides = array<i32>} : memref<2x512xf32, #tpu.memory_space<vmem>>, vector<2x512xf32>,
    return
  }
  func.func @transform_0(%arg0: i32) -> (i32, i32) {
    %c0_i32 = arith.constant 0 : i32
    %c0_i32_0 = arith.constant 0 : i32
    return %c0_i32, %arg0 : i32, i32
  }
  func.func @transform_1(%arg0: i32) -> (i32, i32) {
    %c0_i32 = arith.constant 0 : i32
    %c0_i32_0 = arith.constant 0 : i32
    return %c0_i32, %arg0 : i32, i32
  }
  func.func @transform_2(%arg0: i32) -> (i32, i32) {
    %c0_i32 = arith.constant 0 : i32
    %c0_i32_0 = arith.constant 0 : i32
    %c0_i32_1 = arith.constant 0 : i32
    return %c0_i32, %c0_i32_0 : i32, i32
  }
  func.func @transform_3(%arg0: i32) -> (i32, i32) {
    %c0_i32 = arith.constant 0 : i32
    %c0_i32_0 = arith.constant 0 : i32
    %c0_i32_1 = arith.constant 0 : i32
    return %c0_i32, %c0_i32_0 : i32, i32
  }
  func.func @transform_4(%arg0: i32) -> (i32, i32) {
    %c0_i32 = arith.constant 0 : i32
    %c0_i32_0 = arith.constant 0 : i32
    %c0_i32_1 = arith.constant 0 : i32
    return %c0_i32, %c0_i32_0 : i32, i32
  }
  func.func @transform_5(%arg0: i32) -> (i32, i32) {
    %c0_i32 = arith.constant 0 : i32
    %c0_i32_0 = arith.constant 0 : i32
    %c0_i32_1 = arith.constant 0 : i32
    return %c0_i32, %c0_i32_0 : i32, i32
  }
  func.func @transform_6(%arg0: i32) -> (i32, i32) {
    %c0_i32 = arith.constant 0 : i32
    %c0_i32_0 = arith.constant 0 : i32
    return %c0_i32, %arg0 : i32, i32
  }
}

</mosaic_0001>

<bundles_post_ra>
// kernel: xyt2grid_forward.1
= control target key start
LH: loop header
LB: loop body
LE: loop exit
PB: predicated region body
PF: predicated region fallthrough
CT: control target
= control target key end

     0   :  { %11 = vsyncpa [#allocation4], 0  ;;  %s1680_s0 = inlined_call_operand.vmem [shape: bf16[8,1024], index: 0, kind: input, shape index: {}]   ;;  %s1681_s1 = inlined_call_operand.vmem [shape: bf16[16,1024], index: 1, kind: input, shape index: {}]   ;;  %s1682_s2 = inlined_call_operand.vmem [shape: bf16[64,8], index: 2, kind: input, shape index: {}]   ;;  %s1683_s3 = inlined_call_operand.vmem [shape: bf16[64,16], index: 3, kind: input, shape index: {}]   ;;  %s1684_s4 = inlined_call_operand.vmem [shape: bf16[64,64], index: 4, kind: input, shape index: {}]   ;;  %s1685_s5 = inlined_call_operand.vmem [shape: bf16[2,64], index: 5, kind: input, shape index: {}]   ;;  %s1686_s6 = inlined_call_operand.hbm [shape: f32[2,1024], index: 6, kind: output, shape index: {}]  }
   0x1   :  { %13 = vsyncpa [#allocation4 + $0x1], 0  ;;  %s1475_s21 = smov 0   ;;  %s1477_s22 = smov 0  }
   0x2   :  { %s1479_s23 = smov 0   ;;  %s1481_s24 = smov 0  }
   0x3 LB: > { %s1496_s25 = sadd.s32 4294967295, %s1435_s24   ;;  %s1212_s26 = sadd.s32 4294967294, %s1435_s24   ;;  %s1435_s24 = sphi %s1481_s24, %s1692_s24   ;;  %s1431_s23 = sphi %s1479_s23, %s1691_s23   ;;  %s1427_s22 = sphi %s1477_s22, %s1690_s22   ;;  %s1423_s21 = sphi %s1475_s21, %s1689_s21  }
   0x4   : > { %s1500_s27 = sadd.s32 1, %s1435_s24   ;;  %s52_s28 = sadd.s32 1, %s1431_s23 }
   0x5   : > { %s49_s29 = ssub.s32 %s1435_s24, %s1500_s27  ;;  %p59_p0 = scmp.ne.s32.totalorder %s1431_s23, %s1427_s22 }
   0x6   : > { %p50_p1 = scmp.eq.s32.totalorder %s49_s29, 0  ;;  %p60_p2 = scmp.eq.s32.totalorder %s1435_s24, 0 }
   0x7   : > { %p173_p3 = scmp.eq.s32.totalorder %s1496_s25, 1  ;;  %p178_p4 = scmp.ne.s32.totalorder %s1427_s22, %s1423_s21 }
   0x8   : > { %s1512_s30 = scalar_select %p50_p1, %s1431_s23, %s52_s28  }
   0x9   : > { %p61_p5 = por %p60_p2, %p59_p0  ;;  %p1514_p6 = por %p173_p3, %p59_p0 }
   0xa   : > { %p179_p7 = scmp.eq.s32.totalorder %s1212_s26, 1  ;;  %p1214_p9 = scmp.ge.s32.totalorder %s1435_s24, 2 }
   0xc   : > { %p1518_p8 = por %p179_p7, %p178_p4  ;;  %207 = sbr.rel (%p1214_p9) target bundleno = 26 (0x1a), region = 32 }
  0x13   : > { %219 = sbr.rel (!%p61_p5) target bundleno = 26 (0x1a), region = 40  ;;  %s221_s9 = sand.u32 (%p61_p5), 1, %s1431_s23  }
  0x14   : > { %s1276_s10 = sshll.u32 (%p61_p5), %s1435_s24, 4  ;;  %s1215_s11 = sshll.u32 (%p61_p5), %s221_s9, 5 }
  0x15   : > { %s226_s14 = scalar_lea.vmem (%p61_p5), %s1681_s1, %s1276_s10  ;;  %s223_s15 = scalar_lea.vmem (%p61_p5), [#allocation2], %s1215_s11 }
  0x16   : > { %v239_v0 = vld [vmem:[%s226_s14] sm:$0xff] (%p61_p5)  ;;  %v241_v1 = vld [vmem:[%s226_s14 + $0x8] sm:$0xff] (%p61_p5) }
  0x17   : > { %v243_v2 = vld [vmem:[%s226_s14 + $0x20] sm:$0xff] (%p61_p5)  ;;  %240 = vst [vmem:[%s223_s15] sm:$0xff] (%p61_p5), %v239_v0  ;;  %242 = vst [vmem:[%s223_s15 + $0x8] sm:$0xff] (%p61_p5), %v241_v1  ;;  %v245_v3 = vld [vmem:[%s226_s14 + $0x28] sm:$0xff] (%p61_p5) }
  0x18   : > { %244 = vst [vmem:[%s223_s15 + $0x10] sm:$0xff] (%p61_p5), %v243_v2  ;;  %246 = vst [vmem:[%s223_s15 + $0x18] sm:$0xff] (%p61_p5), %v245_v3 }
  0x1a PF: > { %p1218_p10 = scmp.ge.s32.totalorder %s1435_s24, 1  ;;  %p251_p11 = scmp.lt.s32.totalorder %s1435_s24, 3 }
  0x1c   : > { %p252_p12 = pnand %p1218_p10, %p251_p11 }
  0x1d   : > { %s1533_s16 = sand.u32 (!%p252_p12), 1, %s1427_s22   ;;  %v1437_v4 = vmov (!%p252_p12), 0   ;;  %s1221_s18 = sshll.u32 (!%p252_p12), %s1496_s25, 2  ;;  %v1357_v9 = vld [vmem:[%s1683_s3] sm:$0xff] (!%p252_p12)   ;;  %vm363_vm0 = vcmask (!%p252_p12), 130048   ;;  %vm565_vm1 = vcmask (!%p252_p12), 1043456  }
  0x1e   : > { %255 = sbr.rel (%p252_p12) target bundleno = 798 (0x31e), region = 63  ;;  %s1219_s17 = sshll.u32 (!%p252_p12), %s1533_s16, 5  ;;  %408 = vmatprep.mubr.bf16.mxu0 (!%p252_p12), %v1437_v4  ;;  %481 = vmatprep.mubr.bf16.mxu1 (!%p252_p12), %v1437_v4  ;;  %v1362_v18 = vld [vmem:[%s1683_s3 + $0x8] sm:$0xff] (!%p252_p12)   ;;  %v1363_v19 = vld [vmem:[%s1683_s3 + $0x10] sm:$0xff] (!%p252_p12)   ;;  %v1364_v20 = vld [vmem:[%s1683_s3 + $0x18] sm:$0xff] (!%p252_p12)   ;;  %vm552_vm2 = vcmask (!%p252_p12), 64512  }
  0x1f   : > { %p293_p13 = scmp.lt.s32.totalorder (!%p252_p12), %s1221_s18, 7  ;;  %s260_s19 = scalar_lea.vmem (!%p252_p12), [#allocation2], %s1219_s17  ;;  %v1365_v21 = vld [vmem:[%s1682_s2] sm:$0xff] (!%p252_p12)   ;;  %v1366_v22 = vld [vmem:[%s1682_s2 + $0x8] sm:$0xff] (!%p252_p12)   ;;  %v1367_v23 = vld [vmem:[%s1682_s2 + $0x10] sm:$0xff] (!%p252_p12)   ;;  %vm800_vm3 = vcmask (!%p252_p12), 523264  }
  0x20   : > { %v1351_v5 = vld [vmem:[%s260_s19 + $0x4] ss:$16 sps:$4 sm:$0xff] (!%p252_p12)   ;;  %v1353_v6 = vld [vmem:[%s260_s19 + $0xc] ss:$16 sps:$4 sm:$0xff] (!%p252_p12)   ;;  %v1355_v7 = vld [vmem:[%s260_s19] ss:$16 sps:$4 sm:$0xff] (!%p252_p12)  }
  0x21   : > { %376 = vmatprep.subr.bf16.mxu0 (!%p252_p12), %v1351_v5  ;;  %v1356_v8 = vld [vmem:[%s260_s19 + $0x8] ss:$16 sps:$4 sm:$0xff] (!%p252_p12)   ;;  %449 = vmatprep.subr.bf16.mxu1 (!%p252_p12), %v1353_v6  ;;  %s1277_s29 = sshll.u32 (!%p252_p12), %s1496_s25, 7  ;;  %s1121_s14 = scalar_lea.sflag (!%p252_p12), [#allocation4], %s1533_s16 }
  0x22   : > { %377 = vmatpush1.bf16.msra.mxu0 (!%p252_p12), %v1355_v7  ;;  %450 = vmatpush1.bf16.msra.mxu1 (!%p252_p12), %v1356_v8  ;;  %v1368_v24 = vld [vmem:[%s1682_s2 + $0x18] sm:$0xff] (!%p252_p12)   ;;  %s1636_s13 = scalar_lea.hbm (!%p252_p12), %s1686_s6, %s1277_s29  ;;  %s1439_s25 = smov (!%p252_p12), [#allocation3]  }
  0x23   : > { %s1377_s17 = sshll.u32 (!%p252_p12), %s1439_s25, 4  ;;  %s1378_s17 = int_to_ptr.vmem [resolvable:$false] %s1377_s17 }
  0x25   : > { %s1694_s18 = smov (!%p293_p13, %s1221_s18), 7  ;;  %1231 = vmatmul.mubr.msk.bf16.vlgmr.msra.gmra.mrb[0].mxu0 %vm363_vm0, %v1357_v9  ;;  %1235 = vmatmul.mubr.msk.bf16.vlgmr.msra.gmra.mrb[0].mxu1 %vm363_vm0, %v1357_v9 }
  0x26   : > { %s1222_s28 = sshll.u32 %s1694_s18, 2  ;;  %418 = vmatprep.mubr.bf16.mxu0 %v1437_v4  ;;  %491 = vmatprep.mubr.bf16.mxu1 %v1437_v4  ;;  %s1379_s18 = scalar_lea.vmem %s1378_s17, 256 }
  0x27   : > { %s296_s10 = scalar_lea.vmem %s1680_s0, %s1222_s28  ;;  %s1220_s28 = sshll.u32 %s1533_s16, 3 }
  0x28   : > { %v309_v10 = vld [vmem:[%s296_s10] sm:$0xff]  ;;  %v310_v11 = vld [vmem:[%s296_s10 + $0x8] sm:$0xff]  ;;  %s291_s9 = scalar_lea.vmem [#allocation3], %s1220_s28 }
  0x29   : > { %v1244_v12 = vcombine.high %v309_v10, %v309_v10  ;;  %v1246_v13 = vcombine.high %v310_v11, %v310_v11  ;;  %v1243_v14 = vcombine.low %v309_v10, %v309_v10  ;;  %v1245_v15 = vcombine.low %v310_v11, %v310_v11  ;;  %s1135_s10 = sshll.u32 %s291_s9, 4  ;;  %s1638_s10 = int_to_ptr.vmem [resolvable:$true] %s1135_s10 }
  0x2a   : > { %s1373_s15 = scalar_lea.vmem %s1638_s10, 128  ;;  %p1380_p3 = scmp.lt.s32.totalorder %s1638_s10, %s1378_s17 }
  0x2b   : > { %1247 = vmatprep.subr.msk.bf16.mxu0 %vm565_vm1, %v1244_v12  ;;  %1252 = vmatprep.subr.msk.bf16.mxu1 %vm565_vm1, %v1246_v13  ;;  %v567_v16 = vsel %vm565_vm1, %v1243_v14, 0  ;;  %v573_v17 = vsel %vm565_vm1, %v1245_v15, 0  ;;  %p1374_p0 = scmp.ne.s32.totalorder %s1638_s10, %s1373_s15  ;;  %p1381_p4 = scmp.lt.s32.totalorder %s1379_s18, %s1373_s15 }
  0x2c   : > { %579 = vmatpush1.bf16.msra.mxu0 %v567_v16  ;;  %652 = vmatpush1.bf16.msra.mxu1 %v573_v17 }
  0x2d   : > { %1232 = vmatmul.mubr.msk.bf16.gmra.mrb[4].mxu0 %vm363_vm0, %v1362_v18  ;;  %1236 = vmatmul.mubr.msk.bf16.gmra.mrb[4].mxu1 %vm363_vm0, %v1362_v18  ;;  %p1375_p1 = pnand %p1374_p0, %p1514_p6  ;;  %p1382_p5 = por %p1381_p4, %p1380_p3 }
  0x2e   : > { %428 = vmatprep.mubr.bf16.mxu0 %v1437_v4  ;;  %501 = vmatprep.mubr.bf16.mxu1 %v1437_v4 }
  0x2f   : > { %p1376_p2 = pneg %p1375_p1 }
  0x31   : > { %p1383_p7 = pnand %p1382_p5, %p1376_p2 }
  0x35   : > { %1233 = vmatmul.mubr.msk.bf16.gmra.mrb[8].mxu0 %vm363_vm0, %v1363_v19  ;;  %1237 = vmatmul.mubr.msk.bf16.gmra.mrb[8].mxu1 %vm363_vm0, %v1363_v19 }
  0x36   : > { %438 = vmatprep.mubr.bf16.mxu0 %v1437_v4  ;;  %511 = vmatprep.mubr.bf16.mxu1 %v1437_v4 }
  0x3d   : > { %1234 = vmatmul.mubr.msk.bf16.gmra.mrb[12].mxu0 %vm363_vm0, %v1364_v20  ;;  %1238 = vmatmul.mubr.msk.bf16.gmra.mrb[12].mxu1 %vm363_vm0, %v1364_v20 }
  0x3e   : > { %610 = vmatprep.mubr.bf16.mxu0 %v1437_v4  ;;  %683 = vmatprep.mubr.bf16.mxu1 %v1437_v4 }
  0x45   : > { %1248 = vmatmul.mubr.msk.bf16.vlgmr.msra.gmra.mrb[0].mxu0 %vm552_vm2, %v1365_v21  ;;  %1253 = vmatmul.mubr.msk.bf16.vlgmr.msra.gmra.mrb[0].mxu1 %vm552_vm2, %v1365_v21 }
  0x46   : > { %620 = vmatprep.mubr.bf16.mxu0 %v1437_v4  ;;  %693 = vmatprep.mubr.bf16.mxu1 %v1437_v4 }
  0x4d   : > { %1249 = vmatmul.mubr.msk.bf16.gmra.mrb[4].mxu0 %vm552_vm2, %v1366_v22  ;;  %1254 = vmatmul.mubr.msk.bf16.gmra.mrb[4].mxu1 %vm552_vm2, %v1366_v22 }
  0x4e   : > { %630 = vmatprep.mubr.bf16.mxu0 %v1437_v4  ;;  %703 = vmatprep.mubr.bf16.mxu1 %v1437_v4 }
  0x55   : > { %1250 = vmatmul.mubr.msk.bf16.gmra.mrb[8].mxu0 %vm552_vm2, %v1367_v23  ;;  %1255 = vmatmul.mubr.msk.bf16.gmra.mrb[8].mxu1 %vm552_vm2, %v1367_v23 }
  0x56   : > { %640 = vmatprep.mubr.bf16.mxu0 %v1437_v4  ;;  %713 = vmatprep.mubr.bf16.mxu1 %v1437_v4 }
  0x5d   : > { %1251 = vmatmul.mubr.msk.bf16.gmra.mrb[12].mxu0 %vm552_vm2, %v1368_v24  ;;  %1256 = vmatmul.mubr.msk.bf16.gmra.mrb[12].mxu1 %vm552_vm2, %v1368_v24 }
  0x5e   : > { %845 = vmatprep.mubr.bf16.mxu0 %v1437_v4  ;;  %918 = vmatprep.mubr.bf16.mxu1 %v1437_v4 }
 0x118   : > { %v612_v25 = vpop.f32.mrb[0].mxu0  ;;  %v685_v26 = vpop.f32.mrb[0].mxu1 }
 0x119   : > { %v614_v27 = vpop.f32.mrb[1].mxu0  ;;  %v687_v28 = vpop.f32.mrb[1].mxu1  ;;  %v724_v31 = vmax.f32 %v612_v25, 0.0  ;;  %v726_v32 = vmax.f32 %v685_v26, 0.0 }
 0x11a   : > { %v616_v29 = vpop.f32.mrb[2].mxu0  ;;  %v689_v30 = vpop.f32.mrb[2].mxu1  ;;  %v725_v37 = vmax.f32 %v614_v27, 0.0  ;;  %v727_v38 = vmax.f32 %v687_v28, 0.0 }
 0x11b   : > { %v728_v33 = vmax.f32 %v616_v29, 0.0  ;;  %v730_v34 = vmax.f32 %v689_v30, 0.0  ;;  %v618_v35 = vpop.f32.mrb[3].mxu0  ;;  %v691_v36 = vpop.f32.mrb[3].mxu1 }
 0x11c   : > { %v729_v39 = vmax.f32 %v618_v35, 0.0  ;;  %v731_v40 = vmax.f32 %v691_v36, 0.0 }
 0x11d   : > { %v756_v41 = vpack.c.bf16 %v728_v33, %v724_v31  ;;  %v758_v42 = vpack.c.bf16 %v730_v34, %v726_v32 }
 0x11e   : > { %v757_v43 = vpack.c.bf16 %v729_v39, %v725_v37  ;;  %v759_v44 = vpack.c.bf16 %v731_v40, %v727_v38 }
 0x120   : > { %v622_v45 = vpop.f32.mrb[4].mxu0  ;;  %v695_v46 = vpop.f32.mrb[4].mxu1  ;;  %813 = vmatprep.subr.bf16.mxu0 %v757_v43  ;;  %886 = vmatprep.subr.bf16.mxu1 %v759_v44  ;;  %v1370_v43 = vld [vmem:[%s1684_s4 + $0x8] sm:$0xff]   ;;  %v1371_v44 = vld [vmem:[%s1684_s4 + $0x10] sm:$0xff]  }
 0x121   : > { %v624_v47 = vpop.f32.mrb[5].mxu0  ;;  %v697_v48 = vpop.f32.mrb[5].mxu1  ;;  %814 = vmatpush1.bf16.msra.mxu0 %v756_v41  ;;  %887 = vmatpush1.bf16.msra.mxu1 %v758_v42  ;;  %v732_v51 = vmax.f32 %v622_v45, 0.0  ;;  %v734_v52 = vmax.f32 %v695_v46, 0.0  ;;  %v1369_v42 = vld [vmem:[%s1684_s4] sm:$0xff]   ;;  %v1372_v45 = vld [vmem:[%s1684_s4 + $0x18] sm:$0xff]  }
 0x122   : > { %v626_v49 = vpop.f32.mrb[6].mxu0  ;;  %v699_v50 = vpop.f32.mrb[6].mxu1  ;;  %v733_v57 = vmax.f32 %v624_v47, 0.0  ;;  %v735_v58 = vmax.f32 %v697_v48, 0.0 }
 0x123   : > { %v736_v53 = vmax.f32 %v626_v49, 0.0  ;;  %v738_v54 = vmax.f32 %v699_v50, 0.0  ;;  %v628_v55 = vpop.f32.mrb[7].mxu0  ;;  %v701_v56 = vpop.f32.mrb[7].mxu1 }
 0x124   : > { %v737_v59 = vmax.f32 %v628_v55, 0.0  ;;  %v739_v60 = vmax.f32 %v701_v56, 0.0 }
 0x125   : > { %v760_v61 = vpack.c.bf16 %v736_v53, %v732_v51  ;;  %v762_v62 = vpack.c.bf16 %v738_v54, %v734_v52 }
 0x126   : > { %v761_v63 = vpack.c.bf16 %v737_v59, %v733_v57  ;;  %v763_v0 = vpack.c.bf16 %v739_v60, %v735_v58 }
 0x128   : > { %v632_v1 = vpop.f32.mrb[8].mxu0  ;;  %v705_v2 = vpop.f32.mrb[8].mxu1  ;;  %815 = vmatprep.subr.bf16.mxu0 %v761_v63  ;;  %888 = vmatprep.subr.bf16.mxu1 %v763_v0 }
 0x129   : > { %v634_v3 = vpop.f32.mrb[9].mxu0  ;;  %v707_v5 = vpop.f32.mrb[9].mxu1  ;;  %816 = vmatpush1.bf16.msra.mxu0 %v760_v61  ;;  %889 = vmatpush1.bf16.msra.mxu1 %v762_v62  ;;  %v740_v8 = vmax.f32 %v632_v1, 0.0  ;;  %v742_v9 = vmax.f32 %v705_v2, 0.0 }
 0x12a   : > { %v636_v6 = vpop.f32.mrb[10].mxu0  ;;  %v709_v7 = vpop.f32.mrb[10].mxu1  ;;  %v741_v14 = vmax.f32 %v634_v3, 0.0  ;;  %v743_v15 = vmax.f32 %v707_v5, 0.0 }
 0x12b   : > { %v744_v10 = vmax.f32 %v636_v6, 0.0  ;;  %v746_v11 = vmax.f32 %v709_v7, 0.0  ;;  %v638_v12 = vpop.f32.mrb[11].mxu0  ;;  %v711_v13 = vpop.f32.mrb[11].mxu1 }
 0x12c   : > { %v745_v16 = vmax.f32 %v638_v12, 0.0  ;;  %v747_v17 = vmax.f32 %v711_v13, 0.0 }
 0x12d   : > { %v764_v18 = vpack.c.bf16 %v744_v10, %v740_v8  ;;  %v766_v19 = vpack.c.bf16 %v746_v11, %v742_v9 }
 0x12e   : > { %v765_v20 = vpack.c.bf16 %v745_v16, %v741_v14  ;;  %v767_v21 = vpack.c.bf16 %v747_v17, %v743_v15 }
 0x130   : > { %v642_v22 = vpop.f32.mrb[12].mxu0  ;;  %v715_v23 = vpop.f32.mrb[12].mxu1  ;;  %817 = vmatprep.subr.bf16.mxu0 %v765_v20  ;;  %890 = vmatprep.subr.bf16.mxu1 %v767_v21 }
 0x131   : > { %v644_v24 = vpop.f32.mrb[13].mxu0  ;;  %v717_v25 = vpop.f32.mrb[13].mxu1  ;;  %818 = vmatpush1.bf16.msra.mxu0 %v764_v18  ;;  %891 = vmatpush1.bf16.msra.mxu1 %v766_v19  ;;  %v748_v28 = vmax.f32 %v642_v22, 0.0  ;;  %v750_v29 = vmax.f32 %v715_v23, 0.0 }
 0x132   : > { %v646_v26 = vpop.f32.mrb[14].mxu0  ;;  %v719_v27 = vpop.f32.mrb[14].mxu1  ;;  %v749_v34 = vmax.f32 %v644_v24, 0.0  ;;  %v751_v35 = vmax.f32 %v717_v25, 0.0 }
 0x133   : > { %v752_v30 = vmax.f32 %v646_v26, 0.0  ;;  %v754_v31 = vmax.f32 %v719_v27, 0.0  ;;  %v648_v32 = vpop.f32.mrb[15].mxu0  ;;  %v721_v33 = vpop.f32.mrb[15].mxu1 }
 0x134   : > { %v753_v36 = vmax.f32 %v648_v32, 0.0  ;;  %v755_v37 = vmax.f32 %v721_v33, 0.0 }
 0x135   : > { %v768_v38 = vpack.c.bf16 %v752_v30, %v748_v28  ;;  %v770_v39 = vpack.c.bf16 %v754_v31, %v750_v29 }
 0x136   : > { %v769_v40 = vpack.c.bf16 %v753_v36, %v749_v34  ;;  %v771_v41 = vpack.c.bf16 %v755_v37, %v751_v35 }
 0x138   : > { %819 = vmatprep.subr.bf16.mxu0 %v769_v40  ;;  %892 = vmatprep.subr.bf16.mxu1 %v771_v41 }
 0x139   : > { %820 = vmatpush1.bf16.msra.mxu0 %v768_v38  ;;  %893 = vmatpush1.bf16.msra.mxu1 %v770_v39 }
 0x13c   : > { %1261 = vmatmul.mubr.msk.bf16.vlgmr.msra.gmra.mrb[16].mxu0 %vm800_vm3, %v1369_v42  ;;  %1265 = vmatmul.mubr.msk.bf16.vlgmr.msra.gmra.mrb[16].mxu1 %vm800_vm3, %v1369_v42 }
 0x13d   : > { %855 = vmatprep.mubr.bf16.mxu0 %v1437_v4  ;;  %928 = vmatprep.mubr.bf16.mxu1 %v1437_v4 }
 0x144   : > { %1262 = vmatmul.mubr.msk.bf16.gmra.mrb[20].mxu0 %vm800_vm3, %v1370_v43  ;;  %1266 = vmatmul.mubr.msk.bf16.gmra.mrb[20].mxu1 %vm800_vm3, %v1370_v43 }
 0x145   : > { %865 = vmatprep.mubr.bf16.mxu0 %v1437_v4  ;;  %938 = vmatprep.mubr.bf16.mxu1 %v1437_v4 }
 0x14c   : > { %1263 = vmatmul.mubr.msk.bf16.gmra.mrb[24].mxu0 %vm800_vm3, %v1371_v44  ;;  %1267 = vmatmul.mubr.msk.bf16.gmra.mrb[24].mxu1 %vm800_vm3, %v1371_v44 }
 0x14d   : > { %875 = vmatprep.mubr.bf16.mxu0 %v1437_v4  ;;  %948 = vmatprep.mubr.bf16.mxu1 %v1437_v4 }
 0x154   : > { %1264 = vmatmul.mubr.msk.bf16.gmra.mrb[28].mxu0 %vm800_vm3, %v1372_v45  ;;  %1268 = vmatmul.mubr.msk.bf16.gmra.mrb[28].mxu1 %vm800_vm3, %v1372_v45 }
 0x155   : > { %1043 = vmatprep.mubr.bf16.mxu0 %v1437_v4  ;;  %1084 = vmatprep.mubr.bf16.mxu1 %v1437_v4 }
 0x20f   : > { %v847_v46 = vpop.f32.mrb[16].mxu0  ;;  %v920_v47 = vpop.f32.mrb[16].mxu1 }
 0x210   : > { %v849_v48 = vpop.f32.mrb[17].mxu0  ;;  %v922_v49 = vpop.f32.mrb[17].mxu1  ;;  %v959_v52 = vmax.f32 %v847_v46, 0.0  ;;  %v961_v53 = vmax.f32 %v920_v47, 0.0 }
 0x211   : > { %v851_v50 = vpop.f32.mrb[18].mxu0  ;;  %v924_v51 = vpop.f32.mrb[18].mxu1  ;;  %v960_v58 = vmax.f32 %v849_v48, 0.0  ;;  %v962_v59 = vmax.f32 %v922_v49, 0.0 }
 0x212   : > { %v963_v54 = vmax.f32 %v851_v50, 0.0  ;;  %v965_v55 = vmax.f32 %v924_v51, 0.0  ;;  %v853_v56 = vpop.f32.mrb[19].mxu0  ;;  %v926_v57 = vpop.f32.mrb[19].mxu1 }
 0x213   : > { %v964_v60 = vmax.f32 %v853_v56, 0.0  ;;  %v966_v61 = vmax.f32 %v926_v57, 0.0 }
 0x214   : > { %v991_v62 = vpack.c.bf16 %v963_v54, %v959_v52  ;;  %v993_v63 = vpack.c.bf16 %v965_v55, %v961_v53 }
 0x215   : > { %v992_v0 = vpack.c.bf16 %v964_v60, %v960_v58  ;;  %v994_v4 = vpack.c.bf16 %v966_v61, %v962_v59 }
 0x217   : > { %v857_v1 = vpop.f32.mrb[20].mxu0  ;;  %v930_v2 = vpop.f32.mrb[20].mxu1  ;;  %1011 = vmatprep.subr.bf16.mxu0 %v992_v0  ;;  %1052 = vmatprep.subr.bf16.mxu1 %v994_v4  ;;  %v1106_v4 = vlaneseq }
 0x218   : > { %v859_v3 = vpop.f32.mrb[21].mxu0  ;;  %v932_v5 = vpop.f32.mrb[21].mxu1  ;;  %1012 = vmatpush1.bf16.msra.mxu0 %v991_v62  ;;  %1053 = vmatpush1.bf16.msra.mxu1 %v993_v63  ;;  %v967_v8 = vmax.f32 %v857_v1, 0.0  ;;  %v969_v9 = vmax.f32 %v930_v2, 0.0  ;;  %v1007_v62 = vld [vmem:[%s1685_s5] sm:$0x1] }
 0x219   : > { %v861_v6 = vpop.f32.mrb[22].mxu0  ;;  %v934_v7 = vpop.f32.mrb[22].mxu1  ;;  %v968_v14 = vmax.f32 %v859_v3, 0.0  ;;  %v970_v15 = vmax.f32 %v932_v5, 0.0  ;;  %v1438_v63 = vmov 1983009808  }
 0x21a   : > { %v971_v10 = vmax.f32 %v861_v6, 0.0  ;;  %v973_v11 = vmax.f32 %v934_v7, 0.0  ;;  %v863_v12 = vpop.f32.mrb[23].mxu0  ;;  %v936_v13 = vpop.f32.mrb[23].mxu1  ;;  %v1104_v0 = vunpack.c.l.s4 %v1438_v63  ;;  %v1107_v2 = vshrl.u32 %v1106_v4, 7 }
 0x21b   : > { %v972_v16 = vmax.f32 %v863_v12, 0.0  ;;  %v974_v17 = vmax.f32 %v936_v13, 0.0 }
 0x21c   : > { %v995_v18 = vpack.c.bf16 %v971_v10, %v967_v8  ;;  %v997_v19 = vpack.c.bf16 %v973_v11, %v969_v9  ;;  %v1105_v1 = vunpack.c.0.s8 %v1104_v0 }
 0x21d   : > { %v996_v20 = vpack.c.bf16 %v972_v16, %v968_v14  ;;  %v998_v21 = vpack.c.bf16 %v974_v17, %v970_v15 }
 0x21e   : > { %v1108_v11 = vsub.s32 %v1105_v1, %v1107_v2 }
 0x21f   : > { %v867_v22 = vpop.f32.mrb[24].mxu0  ;;  %v940_v23 = vpop.f32.mrb[24].mxu1  ;;  %1013 = vmatprep.subr.bf16.mxu0 %v996_v20  ;;  %1054 = vmatprep.subr.bf16.mxu1 %v998_v21 }
 0x220   : > { %v869_v24 = vpop.f32.mrb[25].mxu0  ;;  %v942_v25 = vpop.f32.mrb[25].mxu1  ;;  %1014 = vmatpush1.bf16.msra.mxu0 %v995_v18  ;;  %1055 = vmatpush1.bf16.msra.mxu1 %v997_v19  ;;  %v975_v28 = vmax.f32 %v867_v22, 0.0  ;;  %v977_v29 = vmax.f32 %v940_v23, 0.0 }
 0x221   : > { %v871_v26 = vpop.f32.mrb[26].mxu0  ;;  %v944_v27 = vpop.f32.mrb[26].mxu1  ;;  %v976_v34 = vmax.f32 %v869_v24, 0.0  ;;  %v978_v35 = vmax.f32 %v942_v25, 0.0 }
 0x222   : > { %v979_v30 = vmax.f32 %v871_v26, 0.0  ;;  %v981_v31 = vmax.f32 %v944_v27, 0.0  ;;  %v873_v32 = vpop.f32.mrb[27].mxu0  ;;  %v946_v33 = vpop.f32.mrb[27].mxu1 }
 0x223   : > { %v980_v36 = vmax.f32 %v873_v32, 0.0  ;;  %v982_v37 = vmax.f32 %v946_v33, 0.0 }
 0x224   : > { %v999_v38 = vpack.c.bf16 %v979_v30, %v975_v28  ;;  %v1001_v39 = vpack.c.bf16 %v981_v31, %v977_v29 }
 0x225   : > { %v1000_v40 = vpack.c.bf16 %v980_v36, %v976_v34  ;;  %v1002_v41 = vpack.c.bf16 %v982_v37, %v978_v35 }
 0x227   : > { %v877_v42 = vpop.f32.mrb[28].mxu0  ;;  %v950_v43 = vpop.f32.mrb[28].mxu1  ;;  %1015 = vmatprep.subr.bf16.mxu0 %v1000_v40  ;;  %1056 = vmatprep.subr.bf16.mxu1 %v1002_v41 }
 0x228   : > { %v879_v44 = vpop.f32.mrb[29].mxu0  ;;  %v952_v45 = vpop.f32.mrb[29].mxu1  ;;  %1016 = vmatpush1.bf16.msra.mxu0 %v999_v38  ;;  %1057 = vmatpush1.bf16.msra.mxu1 %v1001_v39  ;;  %v983_v48 = vmax.f32 %v877_v42, 0.0  ;;  %v985_v49 = vmax.f32 %v950_v43, 0.0 }
 0x229   : > { %v881_v46 = vpop.f32.mrb[30].mxu0  ;;  %v954_v47 = vpop.f32.mrb[30].mxu1  ;;  %v984_v54 = vmax.f32 %v879_v44, 0.0  ;;  %v986_v55 = vmax.f32 %v952_v45, 0.0 }
 0x22a   : > { %v987_v50 = vmax.f32 %v881_v46, 0.0  ;;  %v989_v51 = vmax.f32 %v954_v47, 0.0  ;;  %v883_v52 = vpop.f32.mrb[31].mxu0  ;;  %v956_v53 = vpop.f32.mrb[31].mxu1 }
 0x22b   : > { %v988_v56 = vmax.f32 %v883_v52, 0.0  ;;  %v990_v57 = vmax.f32 %v956_v53, 0.0 }
 0x22c   : > { %v1003_v58 = vpack.c.bf16 %v987_v50, %v983_v48  ;;  %v1005_v59 = vpack.c.bf16 %v989_v51, %v985_v49 }
 0x22d   : > { %v1004_v60 = vpack.c.bf16 %v988_v56, %v984_v54  ;;  %v1006_v61 = vpack.c.bf16 %v990_v57, %v986_v55 }
 0x22f   : > { %1017 = vmatprep.subr.bf16.mxu0 %v1004_v60  ;;  %1058 = vmatprep.subr.bf16.mxu1 %v1006_v61 }
 0x230   : > { %1018 = vmatpush1.bf16.msra.mxu0 %v1003_v58  ;;  %1059 = vmatpush1.bf16.msra.mxu1 %v1005_v59 }
 0x233   : > { %1269 = vmatmul.mubr.msk.bf16.vlgmr.msra.gmra.mrb[32].mxu0 %vm800_vm3, %v1007_v62  ;;  %1270 = vmatmul.mubr.msk.bf16.vlgmr.msra.gmra.mrb[32].mxu1 %vm800_vm3, %v1007_v62 }
 0x306   : > { %v1045_v3 = vpop.f32.mrb[32].mxu0  ;;  %v1086_v5 = vpop.f32.mrb[32].mxu1 }
 0x307   : > { %v1093_v6 = vmul.f32 0.2, %v1045_v3  ;;  %v1095_v7 = vmul.f32 0.2, %v1086_v5  ;;  %v1047_v8 = vpop.f32.mrb[33].mxu0  ;;  %v1088_v9 = vpop.f32.mrb[33].mxu1 }
 0x308   : > { %v1094_v10 = vmul.f32 0.2, %v1047_v8  ;;  %v1096_v12 = vmul.f32 0.2, %v1088_v9  ;;  %v1049_v13 = vpop.f32.mrb[34].mxu0  ;;  %v1090_v14 = vpop.f32.mrb[34].mxu1 }
 0x309   : > { %v1050_v15 = vpop.f32.mrb[35].mxu0  ;;  %v1091_v16 = vpop.f32.mrb[35].mxu1 }
 0x30a   : > { %v1101_v17 = vcombine.low %v1093_v6, %v1094_v10  ;;  %v1102_v18 = vcombine.low %v1095_v7, %v1096_v12 }
 0x30c   : > { %v1109_v19 = vrot.slane %v1101_v17, %v1108_v11  ;;  %v1116_v20 = vrot.slane %v1102_v18, %v1108_v11 }
 0x30e   : > { %v1117_v21 = vcombine.low %v1109_v19, %v1116_v20 }
 0x310   : > { %1119 = vst [vmem:[%s291_s9] sm:$0xff] %v1117_v21 }
 0x311   : > { %1386 = shalt.err (!%p1383_p7)
}
 0x312   : > { %s1387_s16 = scalar_lea.hbm %s1636_s13, 128  ;;  %s1391_s26 = scalar_lea.hbm %s1686_s6, 256 }
 0x313   : > { %p1388_p10 = scmp.ne.s32.totalorder %s1636_s13, %s1387_s16  ;;  %p1392_p13 = scmp.lt.u32.totalorder %s1636_s13, %s1686_s6 }
 0x314   : > { %p1393_p0 = scmp.lt.u32.totalorder %s1391_s26, %s1387_s16  ;;  %p1395_p2 = scmp.lt.u32.totalorder %s1387_s16, %s1636_s13 }
 0x315   : > { %p1389_p11 = pnand %p1388_p10, %p1514_p6 }
 0x316   : > { %p1394_p1 = por %p1393_p0, %p1392_p13 }
 0x317   : > { %p1390_p12 = pneg %p1389_p11 }
 0x318   : > { %p1396_p3 = por %p1395_p2, %p1394_p1 }
 0x31a   : > { %p1397_p4 = pnand %p1396_p3, %p1390_p12 }
 0x31c   : > { %1400 = shalt.err (!%p1397_p4)
}
 0x31d   : > { %1310 = dma.vmem_to_hbm [thread:$0]  (%p1514_p6), %s1638_s10, 128, %s1636_s13, %s1121_s14  }
 0x31e PF: > { %s1147_s9 = sand.u32 1, %s1423_s21   ;;  %p1313_p5 = pnand %p1214_p9, %p1518_p8 }
 0x31f   : > { %s1148_s11 = scalar_lea.sflag [#allocation4], %s1147_s9 }
 0x320   : > { %1418 = dma.done.wait (!%p1313_p5), %s1148_s11, 128  }
 0x321   : > { %1420 = vsyncadd (!%p1313_p5), %s1148_s11, 4294967168  ;;  %p16_p7 = scmp.ge.s32.totalorder %s1500_s27, 4   ;;  %s1689_s21 = smov %s1427_s22 }
 0x322   : > { %s1690_s22 = smov %s1431_s23  ;;  %s1691_s23 = smov %s1512_s30 }
 0x323   : > { %s1692_s24 = smov %s1500_s27  ;;  %18 = sbr.rel (!%p16_p7) target bundleno = 3 (0x3), region = 110 }
 0x32a   :  { %1153 = vsyncpa [#allocation4], 1 }
 0x32b   :  { %1155 = vsyncpa [#allocation4 + $0x1], 1 }

</bundles_post_ra>
